<compile_context>
chip_gen: v7x
topology: tpu7x:2x2x1
jax: 0.10.0
libtpu: 0.0.40
codegen_flags: <defaults>
</compile_context>

<pallas_src>
import functools

import jax
import jax.numpy as jnp
from jax.experimental import pallas as pl
from jax.experimental.pallas import tpu as pltpu

LANE = 128
_SMALL_1D_BYTES = 256 << 10   # whole-block threshold for the unaligned (1-D) path
_TILE_1D_BYTES = 512 << 10    # per-block payload for unaligned 1-D streaming


def _square_kernel(x_ref, o_ref):
    # Hot path: elementwise x * x on the VPU.
    v = x_ref[...]
    o_ref[...] = v * v


def _sublane_multiple(itemsize: int) -> int:
    # f32/int32 -> 8, bf16/fp16 -> 16, int8/fp8 -> 32 (packed dtypes pack
    # along sublanes, so row tiles must be multiples of the packed height).
    return max(8, 32 // max(1, itemsize))


@functools.lru_cache(maxsize=None)
def _tpu_config():
    kind = ""
    try:
        devices = jax.devices()
        if devices:
            kind = str(getattr(devices[0], "device_kind", "")).lower()
    except Exception:
        pass
    if "v7" in kind:
        # v7x: 64 MiB VMEM/TC, ~3.2 TB/s HBM, 2 TCs -> bigger blocks, more
        # grid steps, smaller single-block threshold so both cores help.
        return {"tile_bytes": 8 << 20, "vmem_limit": 48 << 20,
                "small_bytes": 512 << 10, "min_steps": 8}
    # v5e / v6e: 4 MiB blocks sit at the measured 85-86% roofline plateau and
    # stay friendly to v5e's small default scoped-VMEM limit.
    return {"tile_bytes": 4 << 20, "vmem_limit": 32 << 20,
            "small_bytes": 2 << 20, "min_steps": 4}


def _square_2d(x2d, rows, itemsize, dtype, cfg, cost):
    """Lane-aligned path: x already viewed as a (rows, 128) slab."""
    nbytes = rows * LANE * itemsize
    if nbytes <= cfg["small_bytes"]:
        # Single whole-array VMEM block: one DMA in, one multiply, one DMA out.
        return pl.pallas_call(
            _square_kernel,
            out_shape=jax.ShapeDtypeStruct((rows, LANE), dtype),
            in_specs=[pl.BlockSpec(memory_space=pltpu.MemorySpace.VMEM)],
            out_specs=pl.BlockSpec(memory_space=pltpu.MemorySpace.VMEM),
            cost_estimate=cost,
        )(x2d)

    sub = _sublane_multiple(itemsize)
    tile_rows = max(sub, (cfg["tile_bytes"] // (LANE * itemsize)) // sub * sub)
    if pl.cdiv(rows, tile_rows) < cfg["min_steps"]:
        # Keep >= min_steps blocks so the BlockSpec double-buffering can
        # actually overlap in-DMA / compute / out-DMA on every core.
        tile_rows = max(sub,
                        (pl.cdiv(rows, cfg["min_steps"]) + sub - 1) // sub * sub)
    grid = (pl.cdiv(rows, tile_rows),)

    return pl.pallas_call(
        _square_kernel,
        out_shape=jax.ShapeDtypeStruct((rows, LANE), dtype),
        grid_spec=pltpu.PrefetchScalarGridSpec(
            num_scalar_prefetch=0,
            grid=grid,
            in_specs=[pl.BlockSpec((tile_rows, LANE), lambda i: (i, 0))],
            out_specs=pl.BlockSpec((tile_rows, LANE), lambda i: (i, 0)),
        ),
        compiler_params=pltpu.CompilerParams(
            dimension_semantics=("parallel",),
            vmem_limit_bytes=cfg["vmem_limit"],
        ),
        cost_estimate=cost,
    )(x2d)


def _square_1d(x1d, total, itemsize, dtype, cfg, cost):
    """Fallback for element counts that are not a multiple of 128.

    Streams the flat array directly (Pallas masks the partial tail block),
    so there is no jnp.pad / slice HBM round-trip in the wrapper.
    """
    if total * itemsize <= _SMALL_1D_BYTES:
        return pl.pallas_call(
            _square_kernel,
            out_shape=jax.ShapeDtypeStruct((total,), dtype),
            in_specs=[pl.BlockSpec(memory_space=pltpu.MemorySpace.VMEM)],
            out_specs=pl.BlockSpec(memory_space=pltpu.MemorySpace.VMEM),
            cost_estimate=cost,
        )(x1d)

    sub = _sublane_multiple(itemsize)
    unit = LANE * sub
    tile = max(unit, (_TILE_1D_BYTES // itemsize) // unit * unit)
    if pl.cdiv(total, tile) < cfg["min_steps"]:
        tile = max(unit,
                   (pl.cdiv(total, cfg["min_steps"]) + unit - 1) // unit * unit)
    grid = (pl.cdiv(total, tile),)

    return pl.pallas_call(
        _square_kernel,
        out_shape=jax.ShapeDtypeStruct((total,), dtype),
        grid_spec=pltpu.PrefetchScalarGridSpec(
            num_scalar_prefetch=0,
            grid=grid,
            in_specs=[pl.BlockSpec((tile,), lambda i: (i,))],
            out_specs=pl.BlockSpec((tile,), lambda i: (i,)),
        ),
        compiler_params=pltpu.CompilerParams(
            dimension_semantics=("parallel",),
            vmem_limit_bytes=cfg["vmem_limit"],
        ),
        cost_estimate=cost,
    )(x1d)


def depthmodel_forward(x: jax.Array) -> jax.Array:
    """Pallas implementation of Depthmodel.forward: return x * x."""
    orig_shape = x.shape
    dtype = x.dtype
    total = x.size
    if total == 0:
        return x
    itemsize = jnp.dtype(dtype).itemsize
    cfg = _tpu_config()
    cost = pl.CostEstimate(flops=total, transcendentals=0,
                           bytes_accessed=2 * total * itemsize)

    if total % LANE == 0:
        # Free relabel to a lane-dense (rows, 128) slab — no HBM pass.
        rows = total // LANE
        out = _square_2d(jnp.reshape(x, (rows, LANE)), rows, itemsize, dtype,
                         cfg, cost)
    else:
        out = _square_1d(jnp.reshape(x, (total,)), total, itemsize, dtype,
                         cfg, cost)
    return jnp.reshape(out, orig_shape)


if __name__ == "__main__":
    key = jax.random.PRNGKey(0)
    # NCHW-style input matching the module: batch=2, channels=4, 16x16 spatial.
    x = jax.random.normal(key, (2, 4, 16, 16), dtype=jnp.float32)
    y = depthmodel_forward(x)
    jax.block_until_ready(y)
    assert y.shape == x.shape and y.dtype == x.dtype
    assert jnp.allclose(y, x * x, atol=1e-6, rtol=1e-6)

    # Lane-aligned path with a non-tile-multiple row count.
    x_big = jax.random.normal(jax.random.PRNGKey(1), (3, 7, 137, 128),
                              dtype=jnp.float32)
    y_big = depthmodel_forward(x_big)
    jax.block_until_ready(y_big)
    assert y_big.shape == x_big.shape
    assert jnp.allclose(y_big, x_big * x_big, atol=1e-6, rtol=1e-6)

    # Non-128-multiple element count, tiny: whole-block 1-D path (no padding).
    x_odd = jax.random.normal(jax.random.PRNGKey(2), (3, 5, 7),
                              dtype=jnp.float32)
    y_odd = depthmodel_forward(x_odd)
    jax.block_until_ready(y_odd)
    assert jnp.allclose(y_odd, x_odd * x_odd, atol=1e-6, rtol=1e-6)

    # Non-128-multiple, larger: gridded 1-D streaming with a masked tail block.
    x_rag = jax.random.normal(jax.random.PRNGKey(3), (300, 1001),
                              dtype=jnp.float32)
    y_rag = depthmodel_forward(x_rag)
    jax.block_until_ready(y_rag)
    assert jnp.allclose(y_rag, x_rag * x_rag, atol=1e-6, rtol=1e-6)

    # bf16 exercises the dtype-aware handling.
    x_bf = jax.random.normal(jax.random.PRNGKey(4), (4, 8, 64, 64),
                             dtype=jnp.bfloat16)
    y_bf = depthmodel_forward(x_bf)
    jax.block_until_ready(y_bf)
    assert jnp.allclose(y_bf.astype(jnp.float32),
                        (x_bf * x_bf).astype(jnp.float32),
                        atol=1e-2, rtol=1e-2)

    print("KERNEL_OK")
</pallas_src>

<mosaic_0001>
module attributes {stable_mosaic.version = 11 : i64} {
  func.func @_square_kernel(%arg0: memref<16x128xf32, #tpu.memory_space<vmem>>, %arg1: memref<16x128xf32, #tpu.memory_space<vmem>>) attributes {dimension_semantics = [], scalar_prefetch = 0 : i64, scratch_operands = 0 : i64, tpu.core_type = #tpu.core_type<tc>} {
    %c0 = arith.constant 0 : index
    %c0_0 = arith.constant 0 : index
    %0 = vector.load %arg0[%c0, %c0_0] : memref<16x128xf32, #tpu.memory_space<vmem>>, vector<16x128xf32>
    %1 = arith.mulf %0, %0 : vector<16x128xf32>
    %c0_1 = arith.constant 0 : index
    %c0_2 = arith.constant 0 : index
    %2 = vector.load %arg1[%c0_1, %c0_2] : memref<16x128xf32, #tpu.memory_space<vmem>>, vector<16x128xf32>
    tpu.vector_store %arg1[%c0_1, %c0_2], %1 {strides = array<i32>} : memref<16x128xf32, #tpu.memory_space<vmem>>, vector<16x128xf32>,
    return
  }
}

</mosaic_0001>

<bundles_post_ra>
// kernel: tpu_custom_call.1
= control target key start
LH: loop header
LB: loop body
LE: loop exit
PB: predicated region body
PF: predicated region fallthrough
CT: control target
= control target key end

     0   :  { %6 = vsyncpa [#allocation3], 0  ;;  %s136_s0 = inlined_call_operand.hbm [shape: f32[16,128], index: 0, kind: input, shape index: {}]   ;;  %s137_s1 = inlined_call_operand.hbm [shape: f32[16,128], index: 1, kind: output, shape index: {}]  }
   0x1   :  { %7 = vsyncpa [#allocation4], 0  ;;  %s98_s6 = smov [#allocation2]   ;;  %s50_s10 = scalar_lea.hbm %s136_s0, 256 }
   0x2   :  { %s13_s7 = sshll.u32 %s98_s6, 4  ;;  %p51_p0 = scmp.ne.s32.totalorder %s136_s0, %s50_s10  ;;  %s14_s7 = int_to_ptr.vmem [resolvable:$true] %s13_s7 }
   0x3   :  { %p54_p1 = scmp.lt.u32.totalorder %s50_s10, %s136_s0 }
   0x5   :  { %p56_p2 = pnand %p54_p1, %p51_p0 }
   0x7   :  { %59 = shalt.err (!%p56_p2)
}
   0x8   :  { %s60_s15 = scalar_lea.vmem %s14_s7, 256  ;;  %p65_p4 = scmp.lt.s32.totalorder %s14_s7, %s14_s7 }
   0x9   :  { %p61_p3 = scmp.ne.s32.totalorder %s14_s7, %s60_s15  ;;  %p66_p5 = scmp.lt.s32.totalorder %s60_s15, %s60_s15 }
   0xb   :  { %p67_p6 = por %p66_p5, %p65_p4 }
   0xd   :  { %p68_p7 = pnand %p67_p6, %p61_p3 }
   0xf   :  { %71 = shalt.err (!%p68_p7)
}
  0x10   :  { %s99_s16 = smov 128   ;;  %s100_s17 = smov 8  }
  0x11   :  { %19 = dma.hbm_to_vmem [thread:$0]  %s136_s0, 256, %s14_s7, [#allocation3], %s99_s16, %s99_s16, %s100_s17  }
  0x12   :  { %94 = dma.done.wait [#allocation3], 256  }
  0x13   :  { %95 = vsyncadd [#allocation3], 4294967040  ;;  %s101_s20 = smov [#allocation5]   ;;  %v23_v0 = vld [vmem:[#allocation2] sm:$0xff]  ;;  %v24_v1 = vld [vmem:[#allocation2 + $0x8] sm:$0xff] }
  0x14   :  { %s34_s21 = sshll.u32 %s101_s20, 4  ;;  %v25_v2 = vmul.f32 %v23_v0, %v23_v0  ;;  %v26_v3 = vmul.f32 %v24_v1, %v24_v1  ;;  %s35_s21 = int_to_ptr.vmem [resolvable:$true] %s34_s21 }
  0x15   :  { %s72_s22 = scalar_lea.vmem %s35_s21, 256  ;;  %p77_p9 = scmp.lt.s32.totalorder %s35_s21, %s35_s21 }
  0x16   :  { %27 = vst [vmem:[#allocation5] sm:$0xff] %v25_v2  ;;  %28 = vst [vmem:[#allocation5 + $0x8] sm:$0xff] %v26_v3  ;;  %p73_p8 = scmp.ne.s32.totalorder %s35_s21, %s72_s22  ;;  %p78_p10 = scmp.lt.s32.totalorder %s72_s22, %s72_s22 }
  0x18   :  { %p79_p11 = por %p78_p10, %p77_p9 }
  0x1a   :  { %p80_p12 = pnand %p79_p11, %p73_p8 }
  0x1c   :  { %83 = shalt.err (!%p80_p12)
}
  0x1d   :  { %s84_s24 = scalar_lea.hbm %s137_s1, 256 }
  0x1e   :  { %p85_p13 = scmp.ne.s32.totalorder %s137_s1, %s84_s24  ;;  %p88_p0 = scmp.lt.u32.totalorder %s84_s24, %s137_s1 }
  0x20   :  { %p90_p1 = pnand %p88_p0, %p85_p13 }
  0x22   :  { %93 = shalt.err (!%p90_p1)
}
  0x23   :  { %40 = dma.vmem_to_hbm [thread:$0]  %s35_s21, 256, %s137_s1, [#allocation4], %s99_s16, %s99_s16, %s100_s17  }
  0x24   :  { %96 = dma.done.wait [#allocation4], 256  }
  0x25   :  { %97 = vsyncadd [#allocation4], 4294967040 }
  0x26   :  { %44 = vsyncpa [#allocation3], 1 }
  0x27   :  { %45 = vsyncpa [#allocation4], 1 }

</bundles_post_ra>
